<compile_context>
chip_gen: v7x
topology: tpu7x:2x2x1
jax: 0.10.0
libtpu: 0.0.40
codegen_flags: <defaults>
</compile_context>

<pallas_src>
import jax
import jax.numpy as jnp
from jax.experimental import pallas as pl
from jax.experimental.pallas import tpu as pltpu

_LANE = 128


def _merge_kernel(m_ref, x_ref, y_ref, wb_ref, o_ref):
    # Per-channel weighted sum of the three feature maps + bias (f32 accumulate).
    wb = wb_ref[...]                                    # (tr, 4) f32: w_m, w_x, w_y, bias
    acc = (m_ref[...].astype(jnp.float32) * wb[:, 0:1]
           + x_ref[...].astype(jnp.float32) * wb[:, 1:2]
           + y_ref[...].astype(jnp.float32) * wb[:, 2:3]
           + wb[:, 3:4])
    o_ref[...] = acc.astype(o_ref.dtype)


def _sublane_multiple(dtype):
    itemsize = jnp.dtype(dtype).itemsize
    return max(8, 32 // max(itemsize, 1))       # 8 f32, 16 bf16, 32 int8/fp8


def _round_up(v, m):
    return (v + m - 1) // m * m


def _tpu_budget():
    """Generation-aware (per-slab block-byte target, scoped VMEM limit)."""
    try:
        vmem_cap = int(pltpu.get_tpu_info().vmem_capacity_bytes)
    except Exception:
        vmem_cap = 128 << 20
    if vmem_cap <= (64 << 20):
        # v7x-class: 64 MiB physical VMEM, ~3.2 TB/s HBM -> bigger steps but bounded.
        # 4 slabs x 2 buffers x 3 MiB = 24 MiB < 40 MiB scoped limit.
        return 3 << 20, 40 << 20
    # v5e/v6e class: 128 MiB physical VMEM. 4 x 2 x 4 MiB = 32 MiB < 48 MiB.
    return 4 << 20, 48 << 20


def _pick_tiles(rows, cols, itemsize, sublane, target_bytes):
    """Pick (tr, tc): tr is a sublane multiple (or full rows), tc a 128-multiple
    (or full cols), with tr*tc*itemsize <= target_bytes (up to the minimum tile)."""
    # Lane tile: largest 128-multiple such that one sublane-high strip fits target.
    max_tc = max(_LANE, (target_bytes // (sublane * itemsize)) // _LANE * _LANE)
    tc = cols if cols <= max_tc else max_tc
    # Row tile: fill the remaining budget.
    tr = max(sublane, (target_bytes // (tc * itemsize)) // sublane * sublane)
    if tr >= rows:
        tr = rows                                   # full-extent block (always legal)
    # v7x has 2 TensorCores: make sure there are >= 2 grid steps when possible.
    if pl.cdiv(rows, tr) * pl.cdiv(cols, tc) < 2:
        if rows >= 2 * sublane:
            tr = max(sublane, (rows // 2) // sublane * sublane)
        elif cols >= 2 * _LANE:
            tc = max(_LANE, (cols // 2) // _LANE * _LANE)
    return tr, tc


def merge_module_forward(m, x, y, weight, bias, *, force_pallas=None,
                         min_pallas_bytes=256 << 10):
    """Forward of Merge_Module (att_module='idt', pre_bn=False).

    m, x, y : (B, C, H, W) feature maps.
    weight  : (C, 3) grouped-1x1-conv weights, per-channel order (m, x, y)
              (== torch conv.weight[:, :, 0, 0]).
    bias    : (C,)   grouped-1x1-conv bias.
    Returns (merged, x, y); x and y are identities (returned with no copy).
    """
    B, C, H, W = x.shape
    rows, cols = B * C, H * W
    dtype = x.dtype
    itemsize = jnp.dtype(dtype).itemsize

    w32 = weight.astype(jnp.float32)
    b32 = bias.astype(jnp.float32)

    use_pallas = force_pallas
    if use_pallas is None:
        use_pallas = (rows * cols * itemsize) >= min_pallas_bytes

    if not use_pallas:
        # Tiny-input bypass: launch + single-grid-step overhead dominates; XLA's
        # fused elementwise path is faster for sub-VMEM problems.
        merged = (w32[None, :, 0, None, None] * m.astype(jnp.float32)
                  + w32[None, :, 1, None, None] * x.astype(jnp.float32)
                  + w32[None, :, 2, None, None] * y.astype(jnp.float32)
                  + b32[None, :, None, None]).astype(dtype)
        return merged, x, y

    # Lane-dense slabs: one row per (batch, channel), H*W along the lane dim,
    # zero-padded to a multiple of 128 lanes so stores are unmasked vst.
    cols_p = _round_up(cols, _LANE)

    def slab(v):
        v2 = v.reshape(rows, cols)
        if cols_p != cols:
            v2 = jnp.pad(v2, ((0, 0), (0, cols_p - cols)))
        return v2

    m2, x2, y2 = slab(m), slab(x), slab(y)

    # Packed per-row conv params: (rows, 4) = [w_m, w_x, w_y, bias]. One small
    # DMA per row tile instead of four; block only changes when the row tile does.
    wb = jnp.concatenate([w32, b32[:, None]], axis=1)              # (C, 4)
    wb = jnp.broadcast_to(wb[None], (B, C, 4)).reshape(rows, 4)

    sublane = _sublane_multiple(dtype)
    target_bytes, vmem_limit = _tpu_budget()
    tr, tc = _pick_tiles(rows, cols_p, itemsize, sublane, target_bytes)
    grid = (pl.cdiv(rows, tr), pl.cdiv(cols_p, tc))

    data_spec = pl.BlockSpec((tr, tc), lambda i, j: (i, j))
    wb_spec = pl.BlockSpec((tr, 4), lambda i, j: (i, 0))

    cost = pl.CostEstimate(
        flops=6 * rows * cols_p,
        transcendentals=0,
        bytes_accessed=4 * rows * cols_p * itemsize + wb.nbytes,
    )

    merged2 = pl.pallas_call(
        _merge_kernel,
        out_shape=jax.ShapeDtypeStruct((rows, cols_p), dtype),
        grid_spec=pltpu.PrefetchScalarGridSpec(
            num_scalar_prefetch=0,
            grid=grid,
            in_specs=[data_spec, data_spec, data_spec, wb_spec],
            out_specs=data_spec,
        ),
        compiler_params=pltpu.CompilerParams(
            dimension_semantics=("parallel", "parallel"),
            vmem_limit_bytes=vmem_limit,
        ),
        cost_estimate=cost,
    )(m2, x2, y2, wb)

    merged = merged2[:, :cols].reshape(B, C, H, W)
    # IDT_Block is a pure identity: return x, y directly (no HBM round trip).
    return merged, x, y


if __name__ == "__main__":
    key = jax.random.PRNGKey(0)
    k1, k2, k3, k4, k5 = jax.random.split(key, 5)

    def ref_merge(m, x, y, weight, bias):
        # Pure-JAX reference of General_Merge_Block (cat dim=-2 + reshape + grouped conv).
        return (weight[None, :, 0, None, None] * m
                + weight[None, :, 1, None, None] * x
                + weight[None, :, 2, None, None] * y
                + bias[None, :, None, None])

    B, C, H, W = 2, 4, 16, 16
    m = jax.random.normal(k1, (B, C, H, W), dtype=jnp.float32)
    x = jax.random.normal(k2, (B, C, H, W), dtype=jnp.float32)
    y = jax.random.normal(k3, (B, C, H, W), dtype=jnp.float32)
    # Grouped 1x1 conv params: weight (C, 3) [per-channel (m, x, y) coeffs], bias (C,)
    weight = 0.1 * jax.random.normal(k4, (C, 3), dtype=jnp.float32)
    bias = 0.1 * jax.random.normal(k5, (C,), dtype=jnp.float32)

    # Case 1: Pallas path forced (small shape, >= 2 grid steps via lane split).
    merged, x_out, y_out = merge_module_forward(m, x, y, weight, bias, force_pallas=True)
    merged = jax.block_until_ready(merged)
    ref = ref_merge(m, x, y, weight, bias)
    assert merged.shape == x.shape and merged.dtype == x.dtype
    assert bool(jnp.allclose(merged, ref, atol=1e-5, rtol=1e-5))
    assert bool(jnp.array_equal(x_out, x)) and bool(jnp.array_equal(y_out, y))

    # Case 2: tiny-input auto bypass (plain jnp path), same numbers.
    merged_b, _, _ = merge_module_forward(m, x, y, weight, bias)
    merged_b = jax.block_until_ready(merged_b)
    assert bool(jnp.allclose(merged_b, ref, atol=1e-5, rtol=1e-5))

    # Case 3: H*W not a multiple of 128 exercises the lane-padding path.
    H2, W2 = 10, 10
    m3 = jax.random.normal(k1, (B, C, H2, W2), dtype=jnp.float32)
    x3 = jax.random.normal(k2, (B, C, H2, W2), dtype=jnp.float32)
    y3 = jax.random.normal(k3, (B, C, H2, W2), dtype=jnp.float32)
    merged3, _, _ = merge_module_forward(m3, x3, y3, weight, bias, force_pallas=True)
    merged3 = jax.block_until_ready(merged3)
    ref3 = ref_merge(m3, x3, y3, weight, bias)
    assert bool(jnp.allclose(merged3, ref3, atol=1e-5, rtol=1e-5))

    print("KERNEL_OK")
</pallas_src>

<mosaic_0001>
module attributes {stable_mosaic.version = 11 : i64} {
  func.func @_merge_kernel(%arg0: i32, %arg1: i32, %arg2: memref<8x128xf32, #tpu.memory_space<vmem>>, %arg3: memref<8x128xf32, #tpu.memory_space<vmem>>, %arg4: memref<8x128xf32, #tpu.memory_space<vmem>>, %arg5: memref<8x4xf32, #tpu.memory_space<vmem>>, %arg6: memref<8x128xf32, #tpu.memory_space<vmem>>) attributes {dimension_semantics = [#tpu.dimension_semantics<parallel>, #tpu.dimension_semantics<parallel>], iteration_bounds = array<i64: 1, 2>, scalar_prefetch = 0 : i64, scratch_operands = 0 : i64, tpu.core_type = #tpu.core_type<tc>, window_params = [{transform_indices = @transform_0, window_bounds = array<i64: 8, 128>}, {transform_indices = @transform_1, window_bounds = array<i64: 8, 128>}, {transform_indices = @transform_2, window_bounds = array<i64: 8, 128>}, {transform_indices = @transform_3, window_bounds = array<i64: 8, 4>}, {transform_indices = @transform_4, window_bounds = array<i64: 8, 128>}]} {
    %c0 = arith.constant 0 : index
    %c0_0 = arith.constant 0 : index
    %0 = vector.load %arg5[%c0, %c0_0] : memref<8x4xf32, #tpu.memory_space<vmem>>, vector<8x4xf32>
    %c0_1 = arith.constant 0 : index
    %c0_2 = arith.constant 0 : index
    %1 = vector.load %arg2[%c0_1, %c0_2] : memref<8x128xf32, #tpu.memory_space<vmem>>, vector<8x128xf32>
    %2 = vector.extract_strided_slice %0 {offsets = [0, 0], sizes = [8, 1], strides = [1, 1]} : vector<8x4xf32> to vector<8x1xf32>
    %3 = vector.broadcast %2 : vector<8x1xf32> to vector<8x128xf32>
    %4 = arith.mulf %1, %3 : vector<8x128xf32>
    %c0_3 = arith.constant 0 : index
    %c0_4 = arith.constant 0 : index
    %5 = vector.load %arg3[%c0_3, %c0_4] : memref<8x128xf32, #tpu.memory_space<vmem>>, vector<8x128xf32>
    %6 = vector.extract_strided_slice %0 {offsets = [0, 1], sizes = [8, 1], strides = [1, 1]} : vector<8x4xf32> to vector<8x1xf32>
    %7 = vector.broadcast %6 : vector<8x1xf32> to vector<8x128xf32>
    %8 = arith.mulf %5, %7 : vector<8x128xf32>
    %9 = arith.addf %4, %8 : vector<8x128xf32>
    %c0_5 = arith.constant 0 : index
    %c0_6 = arith.constant 0 : index
    %10 = vector.load %arg4[%c0_5, %c0_6] : memref<8x128xf32, #tpu.memory_space<vmem>>, vector<8x128xf32>
    %11 = vector.extract_strided_slice %0 {offsets = [0, 2], sizes = [8, 1], strides = [1, 1]} : vector<8x4xf32> to vector<8x1xf32>
    %12 = vector.broadcast %11 : vector<8x1xf32> to vector<8x128xf32>
    %13 = arith.mulf %10, %12 : vector<8x128xf32>
    %14 = arith.addf %9, %13 : vector<8x128xf32>
    %15 = vector.extract_strided_slice %0 {offsets = [0, 3], sizes = [8, 1], strides = [1, 1]} : vector<8x4xf32> to vector<8x1xf32>
    %16 = vector.broadcast %15 : vector<8x1xf32> to vector<8x128xf32>
    %17 = arith.addf %14, %16 : vector<8x128xf32>
    %c0_7 = arith.constant 0 : index
    %c0_8 = arith.constant 0 : index
    %18 = vector.load %arg6[%c0_7, %c0_8] : memref<8x128xf32, #tpu.memory_space<vmem>>, vector<8x128xf32>
    tpu.vector_store %arg6[%c0_7, %c0_8], %17 {strides = array<i32>} : memref<8x128xf32, #tpu.memory_space<vmem>>, vector<8x128xf32>,
    return
  }
  func.func @transform_0(%arg0: i32, %arg1: i32) -> (i32, i32) {
    %c0_i32 = arith.constant 0 : i32
    return %arg0, %arg1 : i32, i32
  }
  func.func @transform_1(%arg0: i32, %arg1: i32) -> (i32, i32) {
    %c0_i32 = arith.constant 0 : i32
    return %arg0, %arg1 : i32, i32
  }
  func.func @transform_2(%arg0: i32, %arg1: i32) -> (i32, i32) {
    %c0_i32 = arith.constant 0 : i32
    return %arg0, %arg1 : i32, i32
  }
  func.func @transform_3(%arg0: i32, %arg1: i32) -> (i32, i32) {
    %c0_i32 = arith.constant 0 : i32
    %c0_i32_0 = arith.constant 0 : i32
    return %arg0, %c0_i32 : i32, i32
  }
  func.func @transform_4(%arg0: i32, %arg1: i32) -> (i32, i32) {
    %c0_i32 = arith.constant 0 : i32
    return %arg0, %arg1 : i32, i32
  }
}

</mosaic_0001>

<bundles_post_ra>
// kernel: tpu_custom_call.1
= control target key start
LH: loop header
LB: loop body
LE: loop exit
PB: predicated region body
PF: predicated region fallthrough
CT: control target
= control target key end

     0   :  { %9 = vsyncpa [#allocation3], 0  ;;  %s1011_s0 = inlined_call_operand.hbm [shape: f32[8,256], index: 0, kind: input, shape index: {}]   ;;  %s1012_s1 = inlined_call_operand.hbm [shape: f32[8,256], index: 1, kind: input, shape index: {}]   ;;  %s1013_s2 = inlined_call_operand.vmem [shape: f32[8,256], index: 2, kind: input, shape index: {}]   ;;  %s1014_s3 = inlined_call_operand.vmem [shape: f32[8,4], index: 3, kind: input, shape index: {}]   ;;  %s1015_s4 = inlined_call_operand.hbm [shape: f32[8,256], index: 4, kind: output, shape index: {}]  }
   0x1   :  { %11 = vsyncpa [#allocation3 + $0x1], 0 }
   0x2   :  { %12 = vsyncpa [#allocation6], 0 }
   0x3   :  { %14 = vsyncpa [#allocation6 + $0x1], 0 }
   0x4   :  { %15 = vsyncpa [#allocation4], 0 }
   0x5   :  { %17 = vsyncpa [#allocation4 + $0x1], 0  ;;  %s778_s15 = smov 0   ;;  %s780_s16 = smov 0  }
   0x6   :  { %s782_s17 = smov 0   ;;  %s784_s18 = smov 0  }
   0x7   :  { %s786_s19 = smov 0   ;;  %s788_s20 = smov 0  }
   0x8 LB: > { %s504_s21 = sadd.s32 4294967295, %s744_s20   ;;  %s505_s22 = sadd.s32 4294967294, %s744_s20   ;;  %s744_s20 = sphi %s788_s20, %s23_s20   ;;  %s740_s19 = sphi %s786_s19, %s1035_s19   ;;  %s736_s18 = sphi %s784_s18, %s1034_s18   ;;  %s732_s17 = sphi %s782_s17, %s1033_s17   ;;  %s728_s16 = sphi %s780_s16, %s1032_s16   ;;  %s724_s15 = sphi %s778_s15, %s1031_s15  }
   0x9   : > { %s32_s23 = sadd.s32 1, %s740_s19  ;;  %s44_s24 = sadd.s32 1, %s732_s17 }
   0xa   : > { %p33_p0 = scmp.ge.s32.totalorder %s32_s23, 2  ;;  %p51_p1 = scmp.ne.s32.totalorder %s732_s17, %s728_s16 }
   0xb   : > { %p52_p2 = scmp.eq.s32.totalorder %s744_s20, 0  ;;  %p57_p3 = scmp.ne.s32.totalorder %s728_s16, %s724_s15 }
   0xc   : > { %s1037_s23 = smov (%p33_p0, %s32_s23), 0  ;;  %p58_p5 = scmp.eq.s32.totalorder %s504_s21, 0 }
   0xd   : > { %p819_p4 = por %p52_p2, %p51_p1  ;;  %s40_s26 = ssub.s32 %s740_s19, %s1037_s23 }
   0xe   : > { %p165_p6 = scmp.eq.s32.totalorder %s504_s21, 1  ;;  %p42_p7 = scmp.eq.s32.totalorder %s40_s26, 0 }
   0xf   : > { %p825_p8 = por %p58_p5, %p57_p3  ;;  %p171_p10 = scmp.eq.s32.totalorder %s505_s22, 1 }
  0x10   : > { %p829_p9 = por %p165_p6, %p51_p1  ;;  %p539_p13 = scmp.lt.s32.totalorder %s744_s20, 2 }
  0x11   : > { %s1019_s27 = scalar_select %p825_p8, 1, 0 }
  0x12   : > { %s1020_s28 = scalar_select %p829_p9, 1, 0 }
  0x13   : > { %s834_s29 = scalar_select %p42_p7, %s732_s17, %s44_s24  }
  0x14   : > { %p836_p11 = por %p171_p10, %p57_p3  ;;  %s843_s5 = sand.u32 1, %s732_s17  }
  0x15   : > { %s509_s6 = sshll.u32 %s843_s5, 3  ;;  %s510_s7 = sshll.u32 %s740_s19, 7 }
  0x16   : > { %s1021_s30 = scalar_select %p836_p11, 1, 0 }
  0x17   : > { %s852_s10 = scalar_lea.hbm %s1011_s0, %s510_s7  ;;  %s202_s11 = scalar_lea.vmem [#allocation2], %s509_s6 }
  0x18   : > { %s211_s12 = sshll.u32 %s202_s11, 4  ;;  %p860_p0 = pnand %p539_p13, %p819_p4  ;;  %s856_s12 = int_to_ptr.vmem [resolvable:$true] %s211_s12 }
  0x19   : > { %s199_s14 = scalar_lea.sflag [#allocation3], %s843_s5  ;;  %s598_s21 = scalar_lea.hbm %s852_s10, 128 }
  0x1a   : > { %p599_p3 = scmp.ne.s32.totalorder %s852_s10, %s598_s21  ;;  %p600_p5 = pneg %p860_p0 }
  0x1b   : > { %s603_s25 = scalar_lea.hbm %s1011_s0, 256  ;;  %p604_p4 = scmp.lt.u32.totalorder %s852_s10, %s1011_s0 }
  0x1c   : > { %p601_p6 = pnand %p600_p5, %p599_p3  ;;  %p605_p10 = scmp.lt.u32.totalorder %s603_s25, %s598_s21 }
  0x1d   : > { %p607_p12 = scmp.lt.u32.totalorder %s598_s21, %s852_s10 }
  0x1e   : > { %p602_p7 = pneg %p601_p6  ;;  %p606_p13 = por %p605_p10, %p604_p4 }
  0x20   : > { %p608_p1 = por %p607_p12, %p606_p13 }
  0x22   : > { %p609_p2 = pnand %p608_p1, %p602_p7 }
  0x24   : > { %612 = shalt.err (!%p609_p2)
}
  0x25   : > { %s613_s9 = scalar_lea.vmem %s856_s12, 128  ;;  %s746_s11 = smov [#allocation2]  }
  0x26   : > { %p614_p3 = scmp.ne.s32.totalorder %s856_s12, %s613_s9  ;;  %s618_s22 = sshll.u32 %s746_s11, 4  ;;  %s619_s22 = int_to_ptr.vmem [resolvable:$false] %s618_s22 }
  0x27   : > { %s620_s24 = scalar_lea.vmem %s619_s22, 256  ;;  %p621_p9 = scmp.lt.s32.totalorder %s856_s12, %s619_s22 }
  0x28   : > { %p616_p6 = pnand %p614_p3, %p600_p5  ;;  %p622_p4 = scmp.lt.s32.totalorder %s620_s24, %s613_s9 }
  0x2a   : > { %p617_p11 = pneg %p616_p6  ;;  %p623_p10 = por %p622_p4, %p621_p9 }
  0x2c   : > { %p624_p12 = pnand %p623_p10, %p617_p11 }
  0x2e   : > { %627 = shalt.err (!%p624_p12)
}
  0x2f   : > { %531 = dma.hbm_to_vmem [thread:$0]  (!%p860_p0), %s852_s10, 128, %s856_s12, %s199_s14  }
  0x30   : > { %p1023_p1 = scmp.lt.s32.totalorder %s744_s20, 3  ;;  %p1024_p2 = scmp.ge.s32.totalorder %s744_s20, 1 }
  0x31   : > { %s905_s8 = scalar_lea.hbm %s1012_s1, %s510_s7  ;;  %s222_s9 = scalar_lea.vmem [#allocation5], %s509_s6 }
  0x32   : > { %p896_p7 = pnand %p1024_p2, %p1023_p1  ;;  %s231_s11 = sshll.u32 %s222_s9, 4  ;;  %s232_s11 = int_to_ptr.vmem [resolvable:$true] %s231_s11 }
  0x33   : > { %s219_s10 = scalar_lea.sflag [#allocation6], %s843_s5  ;;  %s628_s12 = scalar_lea.hbm %s905_s8, 128 }
  0x34   : > { %s1025_s21 = scalar_select %p896_p7, 1, 0 }
  0x35   : > { %p629_p9 = scmp.ne.s32.totalorder %s905_s8, %s628_s12  ;;  %s633_s7 = scalar_lea.hbm %s1012_s1, 256 }
  0x36   : > { %p634_p3 = scmp.lt.u32.totalorder %s905_s8, %s1012_s1  ;;  %p635_p6 = scmp.lt.u32.totalorder %s633_s7, %s628_s12 }
  0x37   : > { %p631_p11 = pnand %p629_p9, %p600_p5  ;;  %p637_p10 = scmp.lt.u32.totalorder %s628_s12, %s905_s8 }
  0x38   : > { %p636_p4 = por %p635_p6, %p634_p3 }
  0x39   : > { %p632_p13 = pneg %p631_p11 }
  0x3a   : > { %p638_p12 = por %p637_p10, %p636_p4 }
  0x3c   : > { %p639_p1 = pnand %p638_p12, %p632_p13 }
  0x3e   : > { %642 = shalt.err (!%p639_p1)
}
  0x3f   : > { %s643_s5 = scalar_lea.vmem %s232_s11, 128  ;;  %s747_s6 = smov [#allocation5]  }
  0x40   : > { %p644_p2 = scmp.ne.s32.totalorder %s232_s11, %s643_s5  ;;  %s648_s26 = sshll.u32 %s747_s6, 4  ;;  %s649_s26 = int_to_ptr.vmem [resolvable:$false] %s648_s26 }
  0x41   : > { %s650_s9 = scalar_lea.vmem %s649_s26, 256  ;;  %p651_p8 = scmp.lt.s32.totalorder %s232_s11, %s649_s26 }
  0x42   : > { %p646_p9 = pnand %p644_p2, %p600_p5  ;;  %p652_p7 = scmp.lt.s32.totalorder %s650_s9, %s643_s5 }
  0x44   : > { %p647_p11 = pneg %p646_p9  ;;  %p653_p3 = por %p652_p7, %p651_p8 }
  0x46   : > { %p654_p6 = pnand %p653_p3, %p647_p11 }
  0x48   : > { %657 = shalt.err (!%p654_p6)
}
  0x49   : > { %534 = dma.hbm_to_vmem [thread:$0]  (!%p860_p0), %s905_s8, 128, %s232_s11, %s219_s10  }
  0x4a   : > { %p1026_p13 = scmp.ne.s32.totalorder %s1025_s21, 0 }
  0x4b   : > { %s932_s12 = sand.u32 (!%p1026_p13), 1, %s728_s16   ;;  %p1027_p8 = scmp.ne.s32.totalorder (!%p1026_p13), %s1019_s27, 0 }
  0x4c   : > { %251 = sbr.rel (%p1026_p13) target bundleno = 243 (0xf3), region = 36  ;;  %s935_s14 = sshll.u32 (!%p1026_p13), %s932_s12, 3 }
  0x4d   : > { %s254_s22 = scalar_lea.sflag (!%p1026_p13), [#allocation3], %s932_s12  ;;  %s257_s7 = scalar_lea.vmem (!%p1026_p13), [#allocation2], %s935_s14 }
  0x53   : > { %711 = dma.done.wait (%p1027_p8), %s254_s22, 128  }
  0x54   : > { %713 = vsyncadd (%p1027_p8), %s254_s22, 4294967168  ;;  %s263_s13 = scalar_lea.sflag [#allocation6], %s932_s12  ;;  %s266_s21 = scalar_lea.vmem [#allocation5], %s935_s14 }
  0x55   : > { %715 = dma.done.wait (%p1027_p8), %s263_s13, 128  }
  0x56   : > { %717 = vsyncadd (%p1027_p8), %s263_s13, 4294967168  ;;  %v748_v0 = vmov 0   ;;  %v749_v1 = vmov 2   ;;  %v320_v2 = vld [vmem:[%s1014_s3] sm:$0xff]  ;;  %v750_v3 = vmov 1   ;;  %v751_v4 = vmov 3  }
  0x57   : > { %593 = vset.pattern.permute.xlu0 %v748_v0  ;;  %595 = vset.pattern.permute.xlu1 %v749_v1  ;;  %p310_p0 = scmp.lt.s32.totalorder %s736_s18, 1  ;;  %v321_v6 = vld [vmem:[%s257_s7] sm:$0xff]  ;;  %v328_v7 = vld [vmem:[%s266_s21] sm:$0xff]  ;;  %s519_s6 = sshll.u32 %s736_s18, 7 }
  0x58   : > { %324 = vperm.xlu0 %593, %v320_v2   ;;  %337 = vperm.xlu1 %595, %v320_v2   ;;  %s307_s26 = scalar_lea.vmem [#allocation7], %s935_s14  ;;  %s962_s7 = scalar_lea.hbm %s1015_s4, %s519_s6 }
  0x59   : > { %s311_s27 = scalar_select %p310_p0, %s736_s18, 1 }
  0x5a   : > { %s364_s9 = sshll.u32 %s307_s26, 4  ;;  %s349_s21 = scalar_lea.sflag [#allocation4], %s932_s12  ;;  %s964_s9 = int_to_ptr.vmem [resolvable:$true] %s364_s9 }
  0x5b   : > { %s517_s10 = sshll.u32 %s311_s27, 3  ;;  %s658_s8 = scalar_lea.vmem %s964_s9, 128 }
  0x5c   : > { %594 = vset.pattern.permute.xlu0 %v750_v3  ;;  %596 = vset.pattern.permute.xlu1 %v751_v4  ;;  %s315_s5 = scalar_lea.vmem %s1013_s2, %s517_s10  ;;  %p659_p5 = scmp.ne.s32.totalorder %s964_s9, %s658_s8 }
  0x5d   : > { %330 = vperm.xlu0 %594, %v320_v2   ;;  %343 = vperm.xlu1 %596, %v320_v2   ;;  %v335_v8 = vld [vmem:[%s315_s5] sm:$0xff]  ;;  %p1028_p7 = scmp.ne.s32.totalorder %s1020_s28, 0  ;;  %s752_s18 = smov [#allocation7]  }
  0x5e   : > { %s662_s14 = sshll.u32 %s752_s18, 4  ;;  %s663_s14 = int_to_ptr.vmem [resolvable:$false] %s662_s14 }
  0x5f   : > { %p660_p4 = pnand %p659_p5, %p1028_p7  ;;  %s664_s11 = scalar_lea.vmem %s663_s14, 256 }
  0x60   : > { %p665_p12 = scmp.lt.s32.totalorder %s964_s9, %s663_s14  ;;  %p666_p1 = scmp.lt.s32.totalorder %s664_s11, %s658_s8 }
  0x61   : > { %597 = vset.pattern.permute.xlu0 %v751_v4  ;;  %p661_p10 = pneg %p660_p4 }
  0x62   : > { %p667_p2 = por %p666_p1, %p665_p12 }
  0x64   : > { %p668_p9 = pnand %p667_p2, %p661_p10 }
  0xd7   : > { %v325_v5 = vpop.permute.xlu0 %324  ;;  %v338_v9 = vpop.permute.xlu1 %337 }
  0xd8   : > { %v327_v11 = vmul.f32 %v325_v5, %v321_v6  ;;  %v340_v13 = vmul.f32 %v338_v9, %v335_v8 }
  0xdc   : > { %v331_v10 = vpop.permute.xlu0 %330  ;;  %v344_v15 = vpop.permute.xlu1 %343 }
  0xdd   : > { %v333_v12 = vmul.f32 %v331_v10, %v328_v7 }
  0xdf   : > { %v334_v14 = vadd.f32 %v333_v12, %v327_v11 }
  0xe1   : > { %v341_v16 = vadd.f32 %v340_v13, %v334_v14 }
  0xe3   : > { %v346_v17 = vadd.f32 %v344_v15, %v341_v16 }
  0xe5   : > { %347 = vst [vmem:[%s307_s26] sm:$0xff] %v346_v17 }
  0xe6   : > { %671 = shalt.err (!%p668_p9)
}
  0xe7   : > { %s672_s12 = scalar_lea.hbm %s962_s7, 128  ;;  %s676_s24 = scalar_lea.hbm %s1015_s4, 256 }
  0xe8   : > { %p673_p11 = scmp.ne.s32.totalorder %s962_s7, %s672_s12  ;;  %p677_p13 = scmp.lt.u32.totalorder %s962_s7, %s1015_s4 }
  0xe9   : > { %p678_p8 = scmp.lt.u32.totalorder %s676_s24, %s672_s12  ;;  %p680_p5 = scmp.lt.u32.totalorder %s672_s12, %s962_s7 }
  0xea   : > { %p674_p3 = pnand %p673_p11, %p1028_p7 }
  0xeb   : > { %p679_p0 = por %p678_p8, %p677_p13 }
  0xec   : > { %p675_p6 = pneg %p674_p3 }
  0xed   : > { %p681_p4 = por %p680_p5, %p679_p0 }
  0xef   : > { %p682_p10 = pnand %p681_p4, %p675_p6 }
  0xf1   : > { %685 = shalt.err (!%p682_p10)
}
  0xf2   : > { %526 = dma.vmem_to_hbm [thread:$0]  (%p1028_p7), %s964_s9, 128, %s962_s7, %s349_s21  }
  0xf3 PF: > { %s376_s6 = sand.u32 1, %s724_s15   ;;  %p1029_p12 = scmp.ne.s32.totalorder %s1021_s30, 0 }
  0xf4   : > { %p1030_p1 = scmp.ge.s32.totalorder %s744_s20, 2  ;;  %s377_s26 = scalar_lea.sflag [#allocation4], %s376_s6 }
  0xf6   : > { %p536_p2 = pnand %p1030_p1, %p1029_p12 }
  0xf8   : > { %719 = dma.done.wait (!%p536_p2), %s377_s26, 128  }
  0xf9   : > { %721 = vsyncadd (!%p536_p2), %s377_s26, 4294967168  ;;  %s23_s20 = sadd.s32 1, %s744_s20   ;;  %s1031_s15 = smov %s728_s16 }
  0xfa   : > { %p20_p9 = scmp.ge.s32.totalorder %s23_s20, 4   ;;  %s1032_s16 = smov %s732_s17 }
  0xfb   : > { %s1033_s17 = smov %s834_s29  ;;  %s1034_s18 = smov %s740_s19 }
  0xfc   : > { %s1035_s19 = smov %s1037_s23  ;;  %22 = sbr.rel (!%p20_p9) target bundleno = 8 (0x8), region = 100 }
 0x103   :  { %382 = vsyncpa [#allocation3], 1 }
 0x104   :  { %384 = vsyncpa [#allocation3 + $0x1], 1 }
 0x105   :  { %385 = vsyncpa [#allocation6], 1 }
 0x106   :  { %387 = vsyncpa [#allocation6 + $0x1], 1 }
 0x107   :  { %388 = vsyncpa [#allocation4], 1 }
 0x108   :  { %390 = vsyncpa [#allocation4 + $0x1], 1 }

</bundles_post_ra>
